<compile_context>
chip_gen: v7x
topology: tpu7x:2x2x1
jax: 0.10.0
libtpu: 0.0.40
codegen_flags: <defaults>
</compile_context>

<pallas_src>
import jax
import jax.numpy as jnp
from jax import lax
from jax.experimental import pallas as pl
from jax.experimental.pallas import tpu as pltpu


def self_attention_kernel(x_ref, wqkv_ref, bqkv_ref, o_ref):
    # x_ref: (S, D) — the leading batch dim is squeezed by the BlockSpec.
    S, D = x_ref.shape
    x = x_ref[...]

    # Fused QKV projection: single MXU pass over x.
    qkv = jnp.dot(x, wqkv_ref[...], preferred_element_type=jnp.float32)
    qkv = qkv + bqkv_ref[...]                       # bias broadcast (1, 3D)

    inv_sqrt_d = 1.0 / (float(D) ** 0.5)
    q = qkv[:, :D] * inv_sqrt_d                     # scale folded into q
    k = qkv[:, D:2 * D]
    v = qkv[:, 2 * D:]

    # scores = q @ k^T without materializing a transpose of k.
    scores = lax.dot_general(
        q, k, (((1,), (1,)), ((), ())), preferred_element_type=jnp.float32)

    # Numerically-stable softmax over the key axis (dim=2 in the torch module).
    m = jnp.max(scores, axis=-1, keepdims=True)
    p = jnp.exp(scores - m)
    denom = jnp.sum(p, axis=-1, keepdims=True)
    attn = p * pl.reciprocal(denom, approx=True)    # EUP reciprocal

    weighted = jnp.dot(attn, v, preferred_element_type=jnp.float32)
    o_ref[...] = weighted.astype(o_ref.dtype)


def self_attention(x, wq, bq, wk, bk, wv, bv):
    """x: (B, S, D). Weights (D, D) stored as (in, out); biases (1, D)."""
    B, S, D = x.shape

    # Fuse the three projections into one (D, 3D) weight and (1, 3D) bias.
    wqkv = jnp.concatenate([wq, wk, wv], axis=1)
    bqkv = jnp.concatenate([bq, bk, bv], axis=1)

    seq_in = pl.BlockSpec((pl.Squeezed(), S, D), lambda b: (b, 0, 0))
    seq_out = pl.BlockSpec((pl.Squeezed(), S, D), lambda b: (b, 0, 0))
    # Grid-invariant operands: whole-array VMEM residents (no per-step
    # double-buffering of the weights/biases).
    vmem_whole = pl.BlockSpec(memory_space=pltpu.MemorySpace.VMEM)

    return pl.pallas_call(
        self_attention_kernel,
        out_shape=jax.ShapeDtypeStruct((B, S, D), x.dtype),
        grid_spec=pltpu.PrefetchScalarGridSpec(
            num_scalar_prefetch=0,
            grid=(B,),
            in_specs=[seq_in, vmem_whole, vmem_whole],
            out_specs=seq_out,
        ),
        compiler_params=pltpu.CompilerParams(
            dimension_semantics=("parallel",)),
    )(x, wqkv, bqkv)


def self_attention_ref(x, wq, bq, wk, bk, wv, bv):
    q = x @ wq + bq
    k = x @ wk + bk
    v = x @ wv + bv
    d = x.shape[-1]
    scores = jnp.einsum("bqd,bkd->bqk", q, k) / (d ** 0.5)
    attn = jax.nn.softmax(scores, axis=2)
    return jnp.einsum("bqk,bkd->bqd", attn, v)


if __name__ == "__main__":
    B, S, D = 2, 8, 32

    key = jax.random.PRNGKey(0)
    kx, kq, kk, kv, kbq, kbk, kbv = jax.random.split(key, 7)

    # Deterministic parameter init (shapes match nn.Linear(D, D) x3).
    bound = 1.0 / (D ** 0.5)
    x = jax.random.normal(kx, (B, S, D), dtype=jnp.float32)
    wq = jax.random.uniform(kq, (D, D), jnp.float32, -bound, bound)
    wk = jax.random.uniform(kk, (D, D), jnp.float32, -bound, bound)
    wv = jax.random.uniform(kv, (D, D), jnp.float32, -bound, bound)
    bq = jax.random.uniform(kbq, (1, D), jnp.float32, -bound, bound)
    bk = jax.random.uniform(kbk, (1, D), jnp.float32, -bound, bound)
    bv = jax.random.uniform(kbv, (1, D), jnp.float32, -bound, bound)

    out = self_attention(x, wq, bq, wk, bk, wv, bv)
    out = jax.block_until_ready(out)

    ref = self_attention_ref(x, wq, bq, wk, bk, wv, bv)
    assert out.shape == (B, S, D)
    # Tolerance loosened slightly vs. exact math because the softmax
    # denominator uses the EUP approximate reciprocal.
    assert jnp.allclose(out, ref, atol=2e-3, rtol=2e-3), "mismatch vs reference"

    print("KERNEL_OK")
</pallas_src>

<mosaic_0001>
module attributes {stable_mosaic.version = 11 : i64} {
  func.func @self_attention_kernel(%arg0: i32, %arg1: memref<1x8x32xf32, #tpu.memory_space<vmem>>, %arg2: memref<32x96xf32, #tpu.memory_space<vmem>>, %arg3: memref<1x96xf32, #tpu.memory_space<vmem>>, %arg4: memref<1x8x32xf32, #tpu.memory_space<vmem>>) attributes {dimension_semantics = [#tpu.dimension_semantics<parallel>], iteration_bounds = array<i64: 2>, scalar_prefetch = 0 : i64, scratch_operands = 0 : i64, tpu.core_type = #tpu.core_type<tc>, window_params = [{transform_indices = @transform_0, window_bounds = array<i64: 1, 8, 32>}, {pipeline_mode = #tpu.pipeline_mode<synchronous>, transform_indices = @transform_1, window_bounds = array<i64: 32, 96>}, {pipeline_mode = #tpu.pipeline_mode<synchronous>, transform_indices = @transform_2, window_bounds = array<i64: 1, 96>}, {transform_indices = @transform_3, window_bounds = array<i64: 1, 8, 32>}]} {
    %c0 = arith.constant 0 : index
    %c0_0 = arith.constant 0 : index
    %c0_1 = arith.constant 0 : index
    %0 = vector.load %arg1[%c0, %c0_0, %c0_1] : memref<1x8x32xf32, #tpu.memory_space<vmem>>, vector<1x8x32xf32>
    %1 = vector.shape_cast %0 : vector<1x8x32xf32> to vector<8x32xf32>
    %c0_2 = arith.constant 0 : index
    %c0_3 = arith.constant 0 : index
    %2 = vector.load %arg2[%c0_2, %c0_3] : memref<32x96xf32, #tpu.memory_space<vmem>>, vector<32x96xf32>
    %cst = arith.constant dense<0.000000e+00> : vector<8x96xf32>
    %3 = tpu.matmul %1, %2, %cst {dimension_numbers = #tpu.dot_dimension_numbers<[1], [0], [0], [1], [0, 0, 1, 1], [], []>} : vector<8x32xf32>, vector<32x96xf32>, vector<8x96xf32> -> vector<8x96xf32>
    %c0_4 = arith.constant 0 : index
    %c0_5 = arith.constant 0 : index
    %4 = vector.load %arg3[%c0_4, %c0_5] : memref<1x96xf32, #tpu.memory_space<vmem>>, vector<1x96xf32>
    %5 = vector.broadcast %4 : vector<1x96xf32> to vector<8x96xf32>
    %6 = arith.addf %3, %5 : vector<8x96xf32>
    %7 = vector.extract_strided_slice %6 {offsets = [0, 0], sizes = [8, 32], strides = [1, 1]} : vector<8x96xf32> to vector<8x32xf32>
    %cst_6 = arith.constant 0.176776692 : f32
    %8 = vector.broadcast %cst_6 : f32 to vector<8x32xf32>
    %9 = arith.mulf %7, %8 : vector<8x32xf32>
    %10 = vector.extract_strided_slice %6 {offsets = [0, 32], sizes = [8, 32], strides = [1, 1]} : vector<8x96xf32> to vector<8x32xf32>
    %11 = vector.extract_strided_slice %6 {offsets = [0, 64], sizes = [8, 32], strides = [1, 1]} : vector<8x96xf32> to vector<8x32xf32>
    %cst_7 = arith.constant dense<0.000000e+00> : vector<8x8xf32>
    %12 = tpu.matmul %9, %10, %cst_7 {dimension_numbers = #tpu.dot_dimension_numbers<[1], [1], [0], [0], [0, 0, 1, 0], [], []>} : vector<8x32xf32>, vector<8x32xf32>, vector<8x8xf32> -> vector<8x8xf32>
    %cst_8 = arith.constant dense<0xFF800000> : vector<8xf32>
    %13 = vector.multi_reduction <maximumf>, %12, %cst_8 [1] : vector<8x8xf32> to vector<8xf32>
    %14 = vector.shape_cast %13 : vector<8xf32> to vector<8x1xf32>
    %15 = vector.broadcast %14 : vector<8x1xf32> to vector<8x8xf32>
    %16 = arith.subf %12, %15 : vector<8x8xf32>
    %17 = math.exp %16 : vector<8x8xf32>
    %cst_9 = arith.constant dense<0.000000e+00> : vector<8xf32>
    %18 = vector.multi_reduction <add>, %17, %cst_9 [1] : vector<8x8xf32> to vector<8xf32>
    %19 = vector.shape_cast %18 : vector<8xf32> to vector<8x1xf32>
    %20 = tpu.reciprocal %19 {approx = true} : vector<8x1xf32> -> vector<8x1xf32>
    %21 = vector.broadcast %20 : vector<8x1xf32> to vector<8x8xf32>
    %22 = arith.mulf %17, %21 : vector<8x8xf32>
    %cst_10 = arith.constant dense<0.000000e+00> : vector<8x32xf32>
    %23 = tpu.matmul %22, %11, %cst_10 {dimension_numbers = #tpu.dot_dimension_numbers<[1], [0], [0], [1], [0, 0, 1, 1], [], []>} : vector<8x8xf32>, vector<8x32xf32>, vector<8x32xf32> -> vector<8x32xf32>
    %c0_11 = arith.constant 0 : index
    %c0_12 = arith.constant 0 : index
    %c0_13 = arith.constant 0 : index
    %24 = vector.load %arg4[%c0_11, %c0_12, %c0_13] : memref<1x8x32xf32, #tpu.memory_space<vmem>>, vector<1x8x32xf32>
    %25 = vector.shape_cast %24 : vector<1x8x32xf32> to vector<8x32xf32>
    %26 = vector.shape_cast %23 : vector<8x32xf32> to vector<1x8x32xf32>
    tpu.vector_store %arg4[%c0_11, %c0_12, %c0_13], %26 {strides = array<i32>} : memref<1x8x32xf32, #tpu.memory_space<vmem>>, vector<1x8x32xf32>,
    return
  }
  func.func @transform_0(%arg0: i32) -> (i32, i32, i32) {
    %c0_i32 = arith.constant 0 : i32
    %c0_i32_0 = arith.constant 0 : i32
    %c0_i32_1 = arith.constant 0 : i32
    return %arg0, %c0_i32, %c0_i32_0 : i32, i32, i32
  }
  func.func @transform_1(%arg0: i32) -> (i32, i32) {
    %c0_i32 = arith.constant 0 : i32
    %c0_i32_0 = arith.constant 0 : i32
    %c0_i32_1 = arith.constant 0 : i32
    return %c0_i32, %c0_i32_0 : i32, i32
  }
  func.func @transform_2(%arg0: i32) -> (i32, i32) {
    %c0_i32 = arith.constant 0 : i32
    %c0_i32_0 = arith.constant 0 : i32
    %c0_i32_1 = arith.constant 0 : i32
    return %c0_i32, %c0_i32_0 : i32, i32
  }
  func.func @transform_3(%arg0: i32) -> (i32, i32, i32) {
    %c0_i32 = arith.constant 0 : i32
    %c0_i32_0 = arith.constant 0 : i32
    %c0_i32_1 = arith.constant 0 : i32
    return %arg0, %c0_i32, %c0_i32_0 : i32, i32, i32
  }
}

</mosaic_0001>

<bundles_post_ra>
// kernel: tpu_custom_call.1
= control target key start
LH: loop header
LB: loop body
LE: loop exit
PB: predicated region body
PF: predicated region fallthrough
CT: control target
= control target key end

     0   :  { %8 = vsyncpa [#allocation3], 0  ;;  %s1045_s0 = inlined_call_operand.hbm [shape: f32[2,8,32], index: 0, kind: input, shape index: {}]   ;;  %s1046_s1 = inlined_call_operand.hbm [shape: f32[32,96], index: 1, kind: input, shape index: {}]   ;;  %s1047_s2 = inlined_call_operand.vmem [shape: f32[1,96], index: 2, kind: input, shape index: {}]   ;;  %s1048_s3 = inlined_call_operand.hbm [shape: f32[2,8,32], index: 3, kind: output, shape index: {}]  }
   0x1   :  { %10 = vsyncpa [#allocation3 + $0x1], 0 }
   0x2   :  { %11 = vsyncpa [#allocation6], 0 }
   0x3   :  { %12 = vsyncpa [#allocation4], 0 }
   0x4   :  { %14 = vsyncpa [#allocation4 + $0x1], 0  ;;  %s832_s12 = smov 0   ;;  %s834_s13 = smov 0  }
   0x5   :  { %s836_s14 = smov 0   ;;  %s838_s15 = smov 0  }
   0x6 LB: > { %s853_s16 = sadd.s32 4294967295, %s800_s15   ;;  %s549_s17 = sadd.s32 4294967294, %s800_s15   ;;  %s800_s15 = sphi %s838_s15, %s1068_s15   ;;  %s796_s14 = sphi %s836_s14, %s1067_s14   ;;  %s792_s13 = sphi %s834_s13, %s1066_s13   ;;  %s788_s12 = sphi %s832_s12, %s1065_s12  }
   0x7   : > { %p40_p0 = scmp.ne.s32.totalorder %s792_s13, %s788_s12  ;;  %p1049_p1 = scmp.eq.s32.totalorder %s853_s16, 0 }
   0x8   : > { %p112_p3 = scmp.eq.s32.totalorder %s549_s17, 1  ;;  %p550_p5 = scmp.ge.s32.totalorder %s800_s15, 1 }
   0x9   : > { %p862_p4 = por %p1049_p1, %p40_p0  ;;  %p119_p7 = scmp.lt.s32.totalorder %s800_s15, 3 }
   0xa   : > { %p867_p6 = por %p112_p3, %p40_p0  ;;  %s802_s21 = smov [#allocation5]  }
   0xb   : > { %s1052_s18 = scalar_select %p862_p4, 1, 0 }
   0xc   : > { %s1053_s19 = scalar_select %p867_p6, 1, 0 }
   0xd   : > { %p872_p8 = pnand %p550_p5, %p119_p7  ;;  %s131_s22 = sshll.u32 %s802_s21, 4  ;;  %s876_s22 = int_to_ptr.vmem [resolvable:$true] %s131_s22 }
   0xe   : > { %s888_s24 = sadd.s32 1, %s800_s15   ;;  %s27_s25 = sadd.s32 1, %s796_s14 }
   0xf   : > { %s1054_s20 = scalar_select %p872_p8, 1, 0 }
  0x10   : > { %p612_p9 = pneg %p872_p8  ;;  %s24_s26 = ssub.s32 %s800_s15, %s888_s24 }
  0x11   : > { %s672_s29 = scalar_lea.hbm %s1046_s1, 512 }
  0x12   : > { %p883_p11 = pnand %p612_p9, %p1049_p1  ;;  %p673_p12 = scmp.ne.s32.totalorder %s1046_s1, %s672_s29 }
  0x13   : > { %p679_p5 = scmp.lt.u32.totalorder %s672_s29, %s1046_s1 }
  0x14   : > { %p674_p13 = pneg %p883_p11 }
  0x16   : > { %p675_p0 = pnand %p674_p13, %p673_p12 }
  0x18   : > { %p676_p3 = pneg %p675_p0 }
  0x1a   : > { %p681_p7 = pnand %p679_p5, %p676_p3 }
  0x1c   : > { %684 = shalt.err (!%p681_p7)
}
  0x1d   : > { %s685_s7 = scalar_lea.vmem %s876_s22, 512  ;;  %p693_p2 = scmp.lt.s32.totalorder %s876_s22, %s876_s22 }
  0x1e   : > { %p686_p9 = scmp.ne.s32.totalorder %s876_s22, %s685_s7  ;;  %p694_p6 = scmp.lt.s32.totalorder %s685_s7, %s685_s7 }
  0x20   : > { %p688_p10 = pnand %p686_p9, %p674_p13  ;;  %p695_p4 = por %p694_p6, %p693_p2 }
  0x22   : > { %p689_p1 = pneg %p688_p10 }
  0x24   : > { %p696_p8 = pnand %p695_p4, %p689_p1 }
  0x26   : > { %699 = shalt.err (!%p696_p8)
}
  0x27   : > { %s803_s8 = smov 128   ;;  %s804_s9 = smov 8  }
  0x28   : > { %615 = dma.hbm_to_vmem [thread:$0]  (!%p883_p11), %s1046_s1, 512, %s876_s22, [#allocation6], %s803_s8, %s803_s8, %s804_s9  }
  0x29   : > { %p25_p2 = scmp.eq.s32.totalorder %s24_s26, 0  ;;  %p34_p1 = scmp.ne.s32.totalorder %s796_s14, %s792_s13 }
  0x2a   : > { %p35_p4 = scmp.eq.s32.totalorder %s800_s15, 0  ;;  %p625_p6 = scmp.lt.s32.totalorder %s800_s15, 2 }
  0x2b   : > { %s919_s17 = scalar_select %p25_p2, %s796_s14, %s27_s25  }
  0x2c   : > { %p36_p8 = por %p35_p4, %p34_p1  ;;  %p1056_p10 = scmp.eq.s32.totalorder %s853_s16, 1 }
  0x2d   : > { %s148_s27 = sand.u32 1, %s796_s14   ;;  %s554_s28 = sshll.u32 %s800_s15, 7 }
  0x2e   : > { %p923_p12 = por %p1056_p10, %p34_p1  ;;  %s553_s29 = sshll.u32 %s148_s27, 3 }
  0x2f   : > { %s932_s4 = scalar_lea.hbm %s1045_s0, %s554_s28  ;;  %s152_s22 = scalar_lea.vmem [#allocation2], %s553_s29 }
  0x30   : > { %s159_s25 = sshll.u32 %s152_s22, 4  ;;  %p934_p11 = pnand %p625_p6, %p36_p8  ;;  %s938_s25 = int_to_ptr.vmem [resolvable:$true] %s159_s25 }
  0x31   : > { %s149_s5 = scalar_lea.sflag [#allocation3], %s148_s27  ;;  %s700_s6 = scalar_lea.hbm %s932_s4, 128 }
  0x32   : > { %p701_p13 = scmp.ne.s32.totalorder %s932_s4, %s700_s6  ;;  %p702_p0 = pneg %p934_p11 }
  0x33   : > { %s705_s9 = scalar_lea.hbm %s1045_s0, 256  ;;  %p706_p7 = scmp.lt.u32.totalorder %s932_s4, %s1045_s0 }
  0x34   : > { %p703_p3 = pnand %p702_p0, %p701_p13  ;;  %p707_p9 = scmp.lt.u32.totalorder %s705_s9, %s700_s6 }
  0x35   : > { %p709_p1 = scmp.lt.u32.totalorder %s700_s6, %s932_s4 }
  0x36   : > { %p704_p5 = pneg %p703_p3  ;;  %p708_p2 = por %p707_p9, %p706_p7 }
  0x38   : > { %p710_p4 = por %p709_p1, %p708_p2 }
  0x3a   : > { %p711_p6 = pnand %p710_p4, %p704_p5 }
  0x3c   : > { %714 = shalt.err (!%p711_p6)
}
  0x3d   : > { %s715_s27 = scalar_lea.vmem %s938_s25, 128  ;;  %s805_s28 = smov [#allocation2]  }
  0x3e   : > { %p716_p8 = scmp.ne.s32.totalorder %s938_s25, %s715_s27  ;;  %s720_s29 = sshll.u32 %s805_s28, 4  ;;  %s721_s29 = int_to_ptr.vmem [resolvable:$false] %s720_s29 }
  0x3f   : > { %s722_s23 = scalar_lea.vmem %s721_s29, 256  ;;  %p723_p3 = scmp.lt.s32.totalorder %s938_s25, %s721_s29 }
  0x40   : > { %p718_p10 = pnand %p716_p8, %p702_p0  ;;  %p724_p7 = scmp.lt.s32.totalorder %s722_s23, %s715_s27 }
  0x42   : > { %p719_p13 = pneg %p718_p10  ;;  %p725_p9 = por %p724_p7, %p723_p3 }
  0x44   : > { %p726_p2 = pnand %p725_p9, %p719_p13 }
  0x46   : > { %729 = shalt.err (!%p726_p2)
}
  0x47   : > { %619 = dma.hbm_to_vmem [thread:$0]  (!%p934_p11), %s932_s4, 128, %s938_s25, %s149_s5  }
  0x48   : > { %p1059_p5 = scmp.ne.s32.totalorder %s1054_s20, 0 }
  0x49   : > { %s968_s30 = sand.u32 (!%p1059_p5), 1, %s792_s13   ;;  %p1060_p0 = scmp.ne.s32.totalorder (!%p1059_p5), %s1052_s18, 0 }
  0x4a   : > { %168 = sbr.rel (%p1059_p5) target bundleno = 1179 (0x49b), region = 32  ;;  %s556_s22 = sshll.u32 (!%p1059_p5), %s968_s30, 3 }
  0x4b   : > { %s171_s6 = scalar_lea.sflag (!%p1059_p5), [#allocation3], %s968_s30  ;;  %s174_s7 = scalar_lea.vmem (!%p1059_p5), [#allocation2], %s556_s22 }
  0x51   : > { %775 = dma.done.wait (%p1060_p0), %s171_s6, 128  }
  0x52   : > { %777 = vsyncadd (%p1060_p0), %s171_s6, 4294967168  ;;  %p1061_p11 = scmp.eq.s32.totalorder %s853_s16, 0 }
  0x54   : > { %779 = dma.done.wait (%p1061_p11), [#allocation6], 512   ;;  %p1062_p1 = pmov %p1061_p11 }
  0x55   : > { %v806_v0 = vmov 0.0|0.0   ;;  %vm807_vm0 = vmmov 0   ;;  %v808_v1 = vmov 0.0   ;;  %v202_v2 = vld [vmem:[#allocation5] sm:$0xff]  ;;  %v203_v3 = vld [vmem:[#allocation5 + $0x8] sm:$0xff]  ;;  %v204_v4 = vld [vmem:[#allocation5 + $0x10] sm:$0xff] }
  0x56   : > { %781 = vsyncadd (%p1062_p1), [#allocation6], 4294966784  ;;  %598 = vmatprep.subr.bf16.mxu0 %v806_v0  ;;  %585 = vmatprep.mubr.msk.f32.mxu0 %vm807_vm0, %v808_v1  ;;  %v599_v5 = vpack.c.bf16 %v203_v3, %v202_v2  ;;  %v205_v6 = vld [vmem:[#allocation5 + $0x18] sm:$0xff]  ;;  %vm213_vm1 = vcmask 261120   ;;  %v559_v9 = vld [vmem:[%s1047_s2] ss:$0 sm:$0xff] }
  0x57   : > { %588 = vmatprep.subr.mxu1 %v808_v1  ;;  %590 = vmatprep.mubr.msk.f32.mxu1 %vm807_vm0, %v808_v1  ;;  %v602_v7 = vpack.c.bf16 %v205_v6, %v204_v4  ;;  %v201_v8 = vld [vmem:[%s174_s7] sm:$0xff]  ;;  %s809_s4 = smov 96   ;;  %vm366_vm2 = vcmask 64512   ;;  %s810_s25 = smov 64  }
  0x58   : > { %600 = vmatpush3.bf16.msra.mxu0 %v599_v5  ;;  %s565_s26 = sshll.u32 %s853_s16, 7  ;;  %s200_s5 = scalar_lea.vmem [#allocation7], %s556_s22 }
  0x59   : > { %601 = vmatprep.subr.bf16.mxu0 %v806_v0  ;;  %s469_s8 = sshll.u32 %s200_s5, 4  ;;  %s1000_s11 = scalar_lea.hbm %s1048_s3, %s565_s26  ;;  %s1002_s8 = int_to_ptr.vmem [resolvable:$true] %s469_s8 }
  0x5a   : > { %s456_s27 = scalar_lea.sflag [#allocation4], %s968_s30  ;;  %s730_s28 = scalar_lea.vmem %s1002_s8, 128 }
  0x5b   : > { %p731_p4 = scmp.ne.s32.totalorder %s1002_s8, %s730_s28  ;;  %s811_s16 = smov [#allocation7]  }
  0x5c   : > { %603 = vmatpush3.bf16.msra.mxu0 %v602_v7  ;;  %s734_s29 = sshll.u32 %s811_s16, 4  ;;  %s735_s29 = int_to_ptr.vmem [resolvable:$false] %s734_s29 }
  0x5d   : > { %p732_p6 = pnand %p731_p4, %p923_p12  ;;  %s736_s23 = scalar_lea.vmem %s735_s29, 256 }
  0x5e   : > { %p737_p10 = scmp.lt.s32.totalorder %s1002_s8, %s735_s29  ;;  %p738_p13 = scmp.lt.s32.totalorder %s736_s23, %s730_s28 }
  0x5f   : > { %586 = vmatmul.mubr.msk.f32.vlgmr.msra.gmra.mrb[0].mxu0 %vm213_vm1, %v201_v8  ;;  %p733_p8 = pneg %p732_p6 }
  0x60   : > { %p739_p3 = por %p738_p13, %p737_p10 }
  0x62   : > { %p740_p7 = pnand %p739_p3, %p733_p8 }
 0x132   : > { %v283_v10 = vpop.f32.mrb[0].mxu0 }
 0x133   : > { %v284_v11 = vadd.f32 %v559_v9, %v283_v10  ;;  %v587_v12 = vpop.f32.mrb[1].mxu0 }
 0x135   : > { %289 = vrot.lane.b32.xlu0 %v284_v11, %s809_s4  ;;  %v287_v14 = vmul.f32 0.17677669, %v284_v11 }
 0x1a7   : > { %v290_v13 = vpop.permute.xlu0 %289 }
 0x1a8   : > { %589 = vmatpush3.xpose.msk.msra.mxu1 %vm213_vm1, %v290_v13 }
 0x1a9   : > { %593 = vmatprep.subr.mxu1 %v808_v1 }
 0x1ab   : > { %591 = vmatmul.mubr.msk.f32.vlgmr.msra.gmra.mrb[0].mxu1 %vm213_vm1, %v287_v14 }
 0x1ac   : > { %595 = vmatprep.mubr.msk.f32.mxu1 %vm807_vm0, %v808_v1 }
 0x27e   : > { %v362_v15 = vpop.f32.mrb[0].mxu1 }
 0x27f   : > { %v592_v16 = vpop.f32.mrb[1].mxu1  ;;  %v367_v17 = vsel %vm366_vm2, %v362_v15, -inf }
 0x280   : > { %368 = vmax.xlane.f32.xlu0 %v367_v17 }
 0x30d   : > { %v369_v18 = vpop.xlane.xlu0 %368 }
 0x30e   : > { %v370_v19 = vsub.f32 %v362_v15, %v369_v18 }
 0x310   : > { %v371_v20 = vmul.f32 1.442695, %v370_v19 }
 0x312   : > { %668 = vpow2.f32 %v371_v20 }
 0x31c   : > { %v669_v21 = vpop.eup %668 }
 0x31d   : > { %v373_v22 = vsel %vm366_vm2, %v669_v21, 0.0 }
 0x31e   : > { %374 = vadd.xlane.f32.xlu1 %v373_v22 }
 0x32f   : > { %378 = vrot.lane.b32.xlu1 %v284_v11, %s810_s25 }
 0x3ab   : > { %v375_v23 = vpop.xlane.xlu1 %374 }
 0x3ac   : > { %670 = vrcp.f32 %v375_v23 }
 0x3af   : > { %v379_v24 = vpop.permute.xlu1 %378 }
 0x3b0   : > { %594 = vmatpush3.msra.mxu1 %v379_v24 }
 0x3b6   : > { %v671_v25 = vpop.eup %670 }
 0x3b7   : > { %v377_v26 = vmul.f32 %v671_v25, %v669_v21 }
 0x3b9   : > { %596 = vmatmul.mubr.msk.f32.vlgmr.msra.gmra.mrb[2].mxu1 %vm366_vm2, %v377_v26 }
 0x48c   : > { %v450_v27 = vpop.f32.mrb[2].mxu1 }
 0x48d   : > { %454 = vst.msk [vmem:[%s200_s5] sm:$0xff] %vm213_vm1, %v450_v27  ;;  %v597_v28 = vpop.f32.mrb[3].mxu1 }
 0x48e   : > { %743 = shalt.err (!%p740_p7)
}
 0x48f   : > { %s744_s30 = scalar_lea.hbm %s1000_s11, 128  ;;  %s748_s7 = scalar_lea.hbm %s1048_s3, 256 }
 0x490   : > { %p745_p9 = scmp.ne.s32.totalorder %s1000_s11, %s744_s30  ;;  %p749_p0 = scmp.lt.u32.totalorder %s1000_s11, %s1048_s3 }
 0x491   : > { %p750_p11 = scmp.lt.u32.totalorder %s748_s7, %s744_s30  ;;  %p752_p4 = scmp.lt.u32.totalorder %s744_s30, %s1000_s11 }
 0x492   : > { %p746_p2 = pnand %p745_p9, %p923_p12 }
 0x493   : > { %p751_p1 = por %p750_p11, %p749_p0 }
 0x494   : > { %p747_p5 = pneg %p746_p2 }
 0x495   : > { %p753_p6 = por %p752_p4, %p751_p1 }
 0x497   : > { %p754_p8 = pnand %p753_p6, %p747_p5 }
 0x499   : > { %757 = shalt.err (!%p754_p8)
}
 0x49a   : > { %610 = dma.vmem_to_hbm [thread:$0]  (%p923_p12), %s1002_s8, 128, %s1000_s11, %s456_s27  }
 0x49b PF: > { %s481_s4 = sand.u32 1, %s788_s12   ;;  %p1063_p10 = scmp.ne.s32.totalorder %s1053_s19, 0 }
 0x49c   : > { %p1064_p13 = scmp.ge.s32.totalorder %s800_s15, 2  ;;  %s482_s25 = scalar_lea.sflag [#allocation4], %s481_s4 }
 0x49e   : > { %p621_p3 = pnand %p1064_p13, %p1063_p10 }
 0x4a0   : > { %783 = dma.done.wait (!%p621_p3), %s482_s25, 128  }
 0x4a1   : > { %785 = vsyncadd (!%p621_p3), %s482_s25, 4294967168  ;;  %p17_p7 = scmp.ge.s32.totalorder %s888_s24, 4   ;;  %s1065_s12 = smov %s792_s13 }
 0x4a2   : > { %s1066_s13 = smov %s796_s14  ;;  %s1067_s14 = smov %s919_s17 }
 0x4a3   : > { %s1068_s15 = smov %s888_s24  ;;  %19 = sbr.rel (!%p17_p7) target bundleno = 6 (0x6), region = 81 }
 0x4aa   :  { %487 = vsyncpa [#allocation3], 1 }
 0x4ab   :  { %489 = vsyncpa [#allocation3 + $0x1], 1 }
 0x4ac   :  { %490 = vsyncpa [#allocation6], 1 }
 0x4ad   :  { %491 = vsyncpa [#allocation4], 1 }
 0x4ae   :  { %493 = vsyncpa [#allocation4 + $0x1], 1 }

</bundles_post_ra>
